<compile_context>
chip_gen: v6e
topology: v6e:2x2x1
jax: 0.10.0
libtpu: 0.0.40
codegen_flags: <defaults>
</compile_context>

<pallas_src>
import functools

import jax
import jax.numpy as jnp
from jax.experimental import pallas as pl
from jax.experimental.pallas import tpu as pltpu


def _row_mean_dist(gt_vals, pred_vals, n_kpts, coord_dim):
    """Per-row mean L2 keypoint distance.

    gt_vals / pred_vals: (rows, n_kpts * coord_dim), coordinates interleaved on the
    lane axis ([x0, y0, x1, y1, ...]). Returns (rows, 1) float32.
    """
    nd = n_kpts * coord_dim
    diff = pred_vals.astype(jnp.float32) - gt_vals.astype(jnp.float32)
    sq = diff * diff                                               # (rows, nd)  VPU
    # Constant 0/1 matrix that sums each group of `coord_dim` adjacent lanes into one
    # keypoint column: P[r, c] = 1  iff  c*D <= r < (c+1)*D.
    row = jax.lax.broadcasted_iota(jnp.int32, (nd, n_kpts), 0)
    col = jax.lax.broadcasted_iota(jnp.int32, (nd, n_kpts), 1)
    pair = jnp.where(
        jnp.logical_and(row >= col * coord_dim, row < (col + 1) * coord_dim),
        1.0, 0.0).astype(jnp.float32)
    # Exact f32 pair-sum on the MXU (HIGHEST avoids bf16 contraction rounding).
    dist_sq = jnp.dot(sq, pair,
                      precision=jax.lax.Precision.HIGHEST,
                      preferred_element_type=jnp.float32)          # (rows, n_kpts)
    dist = jnp.sqrt(dist_sq)                                       # EUP
    return jnp.sum(dist, axis=-1, keepdims=True) * (1.0 / n_kpts)  # (rows, 1)


def _single_block_kernel(gt_ref, pred_ref, out_ref, *, threshold, n_kpts,
                         coord_dim, scale):
    err = _row_mean_dist(gt_ref[...], pred_ref[...], n_kpts, coord_dim)
    count = jnp.sum(jnp.where(err < threshold, 1.0, 0.0))
    out_ref[0, 0] = count * scale          # scale = 100 / B, folded at trace time


def _tiled_kernel(gt_ref, pred_ref, out_ref, *, threshold, n_kpts, coord_dim,
                  batch, block_rows):
    err = _row_mean_dist(gt_ref[...], pred_ref[...], n_kpts, coord_dim)
    # Mask rows of a (possibly partial) final tile that fall past the true batch.
    tile = pl.program_id(0)
    local_row = jax.lax.broadcasted_iota(jnp.int32, err.shape, 0)
    in_bounds = (tile * block_rows + local_row) < batch
    hits = jnp.where(jnp.logical_and(in_bounds, err < threshold), 1.0, 0.0)
    # Lane-dense per-tile partial count (unmasked store); reduced in the wrapper so
    # the batch grid axis stays fully parallel.
    out_ref[...] = jnp.sum(hits) + jnp.zeros(out_ref.shape, jnp.float32)


def _single_block_call(gt2, pred2, threshold, batch, n_kpts, coord_dim):
    kernel = functools.partial(
        _single_block_kernel, threshold=float(threshold), n_kpts=n_kpts,
        coord_dim=coord_dim, scale=100.0 / batch)
    out = pl.pallas_call(
        kernel,
        out_shape=jax.ShapeDtypeStruct((1, 1), jnp.float32),
        in_specs=[pl.BlockSpec(memory_space=pltpu.MemorySpace.VMEM),
                  pl.BlockSpec(memory_space=pltpu.MemorySpace.VMEM)],
        out_specs=pl.BlockSpec(memory_space=pltpu.MemorySpace.SMEM),
    )(gt2, pred2)
    return out[0, 0]


def _tiled_call(gt2, pred2, threshold, batch, n_kpts, coord_dim, block_rows):
    nd = gt2.shape[1]
    num_tiles = (batch + block_rows - 1) // block_rows
    kernel = functools.partial(
        _tiled_kernel, threshold=float(threshold), n_kpts=n_kpts,
        coord_dim=coord_dim, batch=batch, block_rows=block_rows)
    partials = pl.pallas_call(
        kernel,
        out_shape=jax.ShapeDtypeStruct((num_tiles, 1, 128), jnp.float32),
        grid_spec=pltpu.PrefetchScalarGridSpec(
            num_scalar_prefetch=0,
            grid=(num_tiles,),
            in_specs=[pl.BlockSpec((block_rows, nd), lambda i: (i, 0)),
                      pl.BlockSpec((block_rows, nd), lambda i: (i, 0))],
            out_specs=pl.BlockSpec((1, 1, 128), lambda i: (i, 0, 0)),
        ),
        compiler_params=pltpu.CompilerParams(
            dimension_semantics=("parallel",)),
    )(gt2, pred2)
    return (100.0 / batch) * jnp.sum(partials[:, 0, 0])


def projection_acc(gt: jax.Array, pred: jax.Array, threshold: float = 5.0, *,
                   block_rows: int | None = None,
                   single_block_max_bytes: int = 1 << 20) -> jax.Array:
    """Projection accuracy (percentage) as a float32 scalar."""
    assert gt.shape == pred.shape and gt.ndim == 3
    B, N, D = gt.shape
    nd = N * D
    # Free contiguous reshape: puts the keypoint*coord axis on the 128-lane dim.
    gt2 = gt.reshape(B, nd)
    pred2 = pred.reshape(B, nd)
    itemsize = jnp.dtype(gt.dtype).itemsize

    if block_rows is None:
        if B * nd * itemsize <= single_block_max_bytes:
            block_rows = B                      # tiny input: single block, no grid
        else:
            # ~2 MiB per input tile; 2 inputs x 2 pipeline buffers stays well inside
            # the scoped-VMEM default on v5e/v6e/v7x.
            block_rows = (2 * 1024 * 1024) // max(1, nd * itemsize)
            block_rows = max(8, (min(B, block_rows) // 8) * 8)

    if block_rows >= B:
        return _single_block_call(gt2, pred2, threshold, B, N, D)
    return _tiled_call(gt2, pred2, threshold, B, N, D, block_rows)


def _reference(gt, pred, threshold):
    e = jnp.linalg.norm(
        pred.astype(jnp.float32) - gt.astype(jnp.float32), axis=-1).mean(axis=-1)
    valid = jnp.count_nonzero(e < threshold)
    return (100.0 * valid / gt.shape[0]).astype(jnp.float32)


if __name__ == "__main__":
    key = jax.random.PRNGKey(0)
    k1, k2, k3, k4 = jax.random.split(key, 4)
    threshold = 5.0

    # --- small demo shape: exercises the single-block path ---
    B, N, D = 8, 16, 2
    gt = jax.random.uniform(k1, (B, N, D), jnp.float32, minval=0.0, maxval=64.0)
    noise = jax.random.normal(k2, (B, N, D), jnp.float32)
    # Per-sample error scales chosen well away from the threshold so accept/reject
    # decisions are numerically unambiguous.
    scales = jnp.array([1.0, 2.0, 10.0, 16.0], jnp.float32)[jnp.arange(B) % 4]
    pred = gt + noise * scales[:, None, None]

    acc_small = jax.block_until_ready(projection_acc(gt, pred, threshold))
    ref_small = _reference(gt, pred, threshold)
    assert jnp.allclose(acc_small, ref_small, atol=1e-3), (acc_small, ref_small)

    # --- larger shape: exercises the batch-tiled "parallel" grid path, including a
    #     partial final tile (200 = 3*64 + 8 rows) with row masking. ---
    B2, N2, D2 = 200, 24, 2
    gt_b = jax.random.uniform(k3, (B2, N2, D2), jnp.float32, minval=0.0, maxval=64.0)
    noise_b = jax.random.normal(k4, (B2, N2, D2), jnp.float32)
    scales_b = jnp.array([1.0, 2.0, 10.0, 16.0], jnp.float32)[jnp.arange(B2) % 4]
    pred_b = gt_b + noise_b * scales_b[:, None, None]

    acc_tiled = jax.block_until_ready(
        projection_acc(gt_b, pred_b, threshold, block_rows=64))
    ref_tiled = _reference(gt_b, pred_b, threshold)
    assert jnp.allclose(acc_tiled, ref_tiled, atol=1e-3), (acc_tiled, ref_tiled)

    print("KERNEL_OK")
</pallas_src>

<mosaic_0001>
module attributes {stable_mosaic.version = 11 : i64} {
  func.func @_single_block_kernel(%arg0: memref<8x32xf32, #tpu.memory_space<vmem>>, %arg1: memref<8x32xf32, #tpu.memory_space<vmem>>, %arg2: memref<1x1xf32, #tpu.memory_space<smem>>) attributes {dimension_semantics = [], scalar_prefetch = 0 : i64, scratch_operands = 0 : i64, tpu.core_type = #tpu.core_type<tc>} {
    %c0 = arith.constant 0 : index
    %c0_0 = arith.constant 0 : index
    %0 = vector.load %arg0[%c0, %c0_0] : memref<8x32xf32, #tpu.memory_space<vmem>>, vector<8x32xf32>
    %c0_1 = arith.constant 0 : index
    %c0_2 = arith.constant 0 : index
    %1 = vector.load %arg1[%c0_1, %c0_2] : memref<8x32xf32, #tpu.memory_space<vmem>>, vector<8x32xf32>
    %2 = arith.subf %1, %0 : vector<8x32xf32>
    %3 = arith.mulf %2, %2 : vector<8x32xf32>
    %4 = tpu.iota {dimensions = array<i32: 0>} : vector<32x16xi32>
    %5 = tpu.iota {dimensions = array<i32: 1>} : vector<32x16xi32>
    %c2_i32 = arith.constant 2 : i32
    %6 = vector.broadcast %c2_i32 : i32 to vector<32x16xi32>
    %7 = arith.muli %5, %6 : vector<32x16xi32>
    %8 = arith.cmpi sge, %4, %7 : vector<32x16xi32>
    %c1_i32 = arith.constant 1 : i32
    %9 = vector.broadcast %c1_i32 : i32 to vector<32x16xi32>
    %10 = arith.addi %5, %9 : vector<32x16xi32>
    %c2_i32_3 = arith.constant 2 : i32
    %11 = vector.broadcast %c2_i32_3 : i32 to vector<32x16xi32>
    %12 = arith.muli %10, %11 : vector<32x16xi32>
    %13 = arith.cmpi slt, %4, %12 : vector<32x16xi32>
    %14 = arith.andi %8, %13 : vector<32x16xi1>
    %cst = arith.constant 1.000000e+00 : f32
    %cst_4 = arith.constant 0.000000e+00 : f32
    %15 = vector.broadcast %cst : f32 to vector<32x16xf32>
    %16 = vector.broadcast %cst_4 : f32 to vector<32x16xf32>
    %17 = arith.select %14, %15, %16 : vector<32x16xi1>, vector<32x16xf32>
    %cst_5 = arith.constant dense<0.000000e+00> : vector<8x16xf32>
    %18 = tpu.matmul %3, %17, %cst_5 {dimension_numbers = #tpu.dot_dimension_numbers<[1], [0], [0], [1], [0, 0, 1, 1], [], []>, precision = #tpu.contract_precision<fp32>} : vector<8x32xf32>, vector<32x16xf32>, vector<8x16xf32> -> vector<8x16xf32>
    %19 = math.sqrt %18 : vector<8x16xf32>
    %cst_6 = arith.constant dense<0.000000e+00> : vector<8xf32>
    %20 = vector.multi_reduction <add>, %19, %cst_6 [1] : vector<8x16xf32> to vector<8xf32>
    %21 = vector.shape_cast %20 : vector<8xf32> to vector<8x1xf32>
    %cst_7 = arith.constant 6.250000e-02 : f32
    %22 = vector.broadcast %cst_7 : f32 to vector<8x1xf32>
    %23 = arith.mulf %21, %22 : vector<8x1xf32>
    %cst_8 = arith.constant 5.000000e+00 : f32
    %24 = vector.broadcast %cst_8 : f32 to vector<8x1xf32>
    %25 = arith.cmpf olt, %23, %24 : vector<8x1xf32>
    %cst_9 = arith.constant 1.000000e+00 : f32
    %cst_10 = arith.constant 0.000000e+00 : f32
    %26 = vector.broadcast %cst_9 : f32 to vector<8x1xf32>
    %27 = vector.broadcast %cst_10 : f32 to vector<8x1xf32>
    %28 = arith.select %25, %26, %27 : vector<8x1xi1>, vector<8x1xf32>
    %29 = vector.shape_cast %28 : vector<8x1xf32> to vector<1x8x1xf32>
    %cst_11 = arith.constant dense<0.000000e+00> : vector<1xf32>
    %30 = vector.multi_reduction <add>, %29, %cst_11 [1, 2] : vector<1x8x1xf32> to vector<1xf32>
    %31 = vector.shape_cast %30 : vector<1xf32> to vector<1x1x1xf32>
    %32 = vector.extract %31[0, 0, 0] : f32 from vector<1x1x1xf32>
    %cst_12 = arith.constant 1.250000e+01 : f32
    %33 = arith.mulf %32, %cst_12 : f32
    %c0_13 = arith.constant 0 : index
    %c0_14 = arith.constant 0 : index
    %34 = memref.load %arg2[%c0_13, %c0_14] : memref<1x1xf32, #tpu.memory_space<smem>>
    memref.store %33, %arg2[%c0_13, %c0_14] : memref<1x1xf32, #tpu.memory_space<smem>>
    return
  }
}

</mosaic_0001>

<bundles_post_ra>
// kernel: tpu_custom_call.1
= control target key start
LH: loop header
LB: loop body
LE: loop exit
PB: predicated region body
PF: predicated region fallthrough
CT: control target
= control target key end

     0   :  { %7 = vsyncpa [#allocation3], 0  ;;  %s885_s0 = inlined_call_operand.hbm [shape: f32[8,32], index: 0, kind: input, shape index: {}]   ;;  %s886_s1 = inlined_call_operand.hbm [shape: f32[8,32], index: 1, kind: input, shape index: {}]   ;;  %s887_s2 = inlined_call_operand.hbm [shape: f32[1,1], index: 2, kind: output, shape index: {}]  }
   0x1   :  { %8 = vsyncpa [#allocation6], 0 }
   0x2   :  { %9 = vsyncpa [#allocation4], 0  ;;  %s746_s9 = smov [#allocation2]   ;;  %s747_s11 = smov [#allocation5]  }
   0x3   :  { %s16_s10 = sshll.u32 %s746_s9, 4  ;;  %s26_s12 = sshll.u32 %s747_s11, 4  ;;  %s17_s10 = int_to_ptr.vmem [resolvable:$true] %s16_s10  ;;  %s27_s12 = int_to_ptr.vmem [resolvable:$true] %s26_s12 }
   0x4   :  { %s700_s13 = scalar_lea.vmem %s17_s10, 128  ;;  %p705_p1 = scmp.lt.s32.totalorder %s17_s10, %s17_s10 }
   0x5   :  { %p701_p0 = scmp.ne.s32.totalorder %s17_s10, %s700_s13  ;;  %p706_p2 = scmp.lt.s32.totalorder %s700_s13, %s700_s13 }
   0x7   :  { %p707_p3 = por %p706_p2, %p705_p1 }
   0x9   :  { %p708_p4 = pnand %p707_p3, %p701_p0 }
   0xb   :  { %711 = shalt.err (!%p708_p4)
}
   0xc   :  { %19 = dma.hbm_to_vmem [thread:$0]  %s885_s0, 128, %s17_s10, [#allocation3]  }
   0xd   :  { %s720_s16 = scalar_lea.vmem %s27_s12, 128  ;;  %p725_p6 = scmp.lt.s32.totalorder %s27_s12, %s27_s12 }
   0xe   :  { %p721_p5 = scmp.ne.s32.totalorder %s27_s12, %s720_s16  ;;  %p726_p7 = scmp.lt.s32.totalorder %s720_s16, %s720_s16 }
  0x10   :  { %p727_p8 = por %p726_p7, %p725_p6 }
  0x12   :  { %p728_p9 = pnand %p727_p8, %p721_p5 }
  0x14   :  { %731 = shalt.err (!%p728_p9)
}
  0x15   :  { %29 = dma.hbm_to_vmem [thread:$0]  %s886_s1, 128, %s27_s12, [#allocation6]  }
  0x16   :  { %740 = dma.done.wait [#allocation3], 128  }
  0x17   :  { %741 = vsyncadd [#allocation3], 4294967168 }
  0x18   :  { %742 = dma.done.wait [#allocation6], 128  }
  0x19   :  { %743 = vsyncadd [#allocation6], 4294967168  ;;  %v40_v0 = vlaneseq  ;;  %v748_v1 = vmov 0.0   ;;  %vm749_vm0 = vmmov 0   ;;  %v36_v10 = vld [vmem:[#allocation2] sm:$0xff]  ;;  %v37_v11 = vld [vmem:[#allocation5] sm:$0xff] }
  0x1a   :  { %616 = vmatprep.subr.mxu0 %v748_v1  ;;  %627 = vmatprep.subr.mxu1 %v748_v1  ;;  %v38_v13 = vsub.f32 %v37_v11, %v36_v10  ;;  %v750_v14 = vmov 1.0   ;;  %vm66_vm11 = vcmask 261120   ;;  %vm538_vm15 = vcmask 130048   ;;  %s751_s19 = smov [#allocation7]  }
  0x1b   :  { %v41_v2 = vshrl.u32 %v40_v0, 7  ;;  %v46_v3 = vand.u32 127, %v40_v0  ;;  %624 = vmatprep.mubr.msk.f32.mxu0 %vm749_vm0, %v748_v1  ;;  %635 = vmatprep.mubr.msk.f32.mxu1 %vm749_vm0, %v748_v1 }
  0x1c   :  { %v39_v20 = vmul.f32 %v38_v13, %v38_v13 }
  0x1d   :  { %v44_v4 = vadd.s32 24, %v41_v2  ;;  %v47_v5 = vmul.u32 2, %v46_v3  ;;  %v52_v6 = vadd.s32 1, %v46_v3  ;;  %v43_v7 = vadd.s32 16, %v41_v2 }
  0x1e   :  { %v42_v8 = vadd.s32 8, %v41_v2  ;;  %v68_v27 = vsel %vm66_vm11, %v39_v20, 0 }
  0x1f   :  { %vm51_vm1 = vcmp.ge.s32.totalorder %v44_v4, %v47_v5  ;;  %v53_v9 = vmul.u32 2, %v52_v6  ;;  %vm50_vm2 = vcmp.ge.s32.totalorder %v43_v7, %v47_v5  ;;  %vm48_vm8 = vcmp.ge.s32.totalorder %v41_v2, %v47_v5 }
  0x20   :  { %vm49_vm5 = vcmp.ge.s32.totalorder %v42_v8, %v47_v5  ;;  %v820_v30 = vand.u32 4294901760, %v68_v27 }
  0x21   :  { %vm57_vm3 = vcmp.lt.s32.totalorder %v44_v4, %v53_v9  ;;  %vm56_vm4 = vcmp.lt.s32.totalorder %v43_v7, %v53_v9  ;;  %vm55_vm6 = vcmp.lt.s32.totalorder %v42_v8, %v53_v9  ;;  %vm54_vm9 = vcmp.lt.s32.totalorder %v41_v2, %v53_v9 }
  0x22   :  { %vm779_vm7 = vmand %vm51_vm1, %vm57_vm3  ;;  %v136_v34 = vsub.f32 %v68_v27, %v820_v30  ;;  %vm545_vm1 = vcmask 7168  }
  0x23   :  { %617 = vmatpush3.msk.msra.mxu0 %vm779_vm7, %v750_v14  ;;  %vm786_vm10 = vmand %vm50_vm2, %vm56_vm4  ;;  %v65_v16 = vsel %vm779_vm7, 1.0, %v748_v1 }
  0x24   :  { %618 = vmatprep.subr.mxu0 %v748_v1  ;;  %v64_v17 = vsel %vm786_vm10, 1.0, %v748_v1  ;;  %vm797_vm12 = vmand %vm49_vm5, %vm55_vm6  ;;  %v170_v19 = vsub.f32 %v65_v16, %v65_v16  ;;  %v137_v39 = vand.u32 4294901760, %v136_v34 }
  0x25   :  { %619 = vmatpush3.msk.msra.mxu0 %vm786_vm10, %v750_v14  ;;  %v176_v21 = vsub.f32 %v64_v17, %v64_v17  ;;  %v63_v22 = vsel %vm797_vm12, 1.0, %v748_v1  ;;  %vm809_vm13 = vmand %vm48_vm8, %vm54_vm9 }
  0x26   :  { %620 = vmatprep.subr.mxu0 %v748_v1  ;;  %v182_v24 = vsub.f32 %v63_v22, %v63_v22  ;;  %v171_v25 = vand.u32 4294901760, %v170_v19  ;;  %v62_v26 = vsel %vm809_vm13, 1.0, %v748_v1  ;;  %v138_v42 = vsub.f32 %v136_v34, %v137_v39 }
  0x27   :  { %621 = vmatpush3.msk.msra.mxu0 %vm797_vm12, %v750_v14  ;;  %v188_v28 = vsub.f32 %v62_v26, %v62_v26  ;;  %v177_v29 = vand.u32 4294901760, %v176_v21 }
  0x28   :  { %v172_v31 = vsub.f32 %v170_v19, %v171_v25  ;;  %622 = vmatprep.subr.mxu0 %v748_v1  ;;  %v183_v32 = vand.u32 4294901760, %v182_v24  ;;  %v139_v44 = vand.u32 4294901760, %v138_v42 }
  0x29   :  { %623 = vmatpush3.msk.msra.mxu0 %vm809_vm13, %v750_v14  ;;  %v178_v33 = vsub.f32 %v176_v21, %v177_v29  ;;  %v189_v35 = vand.u32 4294901760, %v188_v28 }
  0x2a   :  { %v173_v36 = vand.u32 4294901760, %v172_v31  ;;  %638 = vmatprep.subr.mxu0 %v748_v1  ;;  %v184_v37 = vsub.f32 %v182_v24, %v183_v32  ;;  %625 = vmatmul.mubr.f32.vlgmr.msra.gmra.mxu0 %v139_v44 }
  0x2b   :  { %v179_v38 = vand.u32 4294901760, %v178_v33  ;;  %v190_v40 = vsub.f32 %v188_v28, %v189_v35  ;;  %639 = vmatpush3.msra.mxu0 %v170_v19  ;;  %646 = vmatprep.mubr.msk.f32.mxu0 %vm749_vm0, %v748_v1 }
  0x2c   :  { %628 = vmatpush3.msra.mxu1 %v173_v36  ;;  %v185_v41 = vand.u32 4294901760, %v184_v37  ;;  %640 = vmatprep.subr.mxu0 %v748_v1 }
  0x2d   :  { %629 = vmatprep.subr.mxu1 %v748_v1  ;;  %v191_v43 = vand.u32 4294901760, %v190_v40  ;;  %641 = vmatpush3.msra.mxu0 %v176_v21 }
  0x2e   :  { %630 = vmatpush3.msra.mxu1 %v179_v38  ;;  %642 = vmatprep.subr.mxu0 %v748_v1 }
  0x2f   :  { %631 = vmatprep.subr.mxu1 %v748_v1  ;;  %643 = vmatpush3.msra.mxu0 %v182_v24 }
  0x30   :  { %632 = vmatpush3.msra.mxu1 %v185_v41  ;;  %644 = vmatprep.subr.mxu0 %v748_v1 }
  0x31   :  { %633 = vmatprep.subr.mxu1 %v748_v1  ;;  %645 = vmatpush3.msra.mxu0 %v188_v28 }
  0x32   :  { %634 = vmatpush3.msra.mxu1 %v191_v43  ;;  %647 = vmatmul.mubr.f32.vlgmr.msra.gmra.mxu0 %v136_v34 }
  0x33   :  { %636 = vmatmul.mubr.f32.vlgmr.msra.gmra.mxu1 %v820_v30  ;;  %649 = vmatprep.subr.mxu1 %v748_v1 }
  0x34   :  { %650 = vmatpush3.msk.msra.mxu1 %vm779_vm7, %v750_v14  ;;  %660 = vmatprep.subr.mxu0 %v748_v1 }
  0x35   :  { %651 = vmatprep.subr.mxu1 %v748_v1  ;;  %661 = vmatpush3.msra.mxu0 %v171_v25 }
  0x36   :  { %652 = vmatpush3.msk.msra.mxu1 %vm786_vm10, %v750_v14  ;;  %662 = vmatprep.subr.mxu0 %v748_v1 }
  0x37   :  { %653 = vmatprep.subr.mxu1 %v748_v1  ;;  %657 = vmatprep.mubr.msk.f32.mxu1 %vm749_vm0, %v748_v1 }
  0x38   :  { %654 = vmatpush3.msk.msra.mxu1 %vm797_vm12, %v750_v14  ;;  %663 = vmatpush3.msra.mxu0 %v177_v29 }
  0x39   :  { %655 = vmatprep.subr.mxu1 %v748_v1  ;;  %664 = vmatprep.subr.mxu0 %v748_v1 }
  0x3a   :  { %656 = vmatpush3.msk.msra.mxu1 %vm809_vm13, %v750_v14  ;;  %665 = vmatpush3.msra.mxu0 %v183_v32 }
  0x3b   :  { %658 = vmatmul.mubr.f32.vlgmr.msra.gmra.mxu1 %v137_v39  ;;  %671 = vmatprep.subr.mxu1 %v748_v1 }
  0x3c   :  { %672 = vmatpush3.msk.msra.mxu1 %vm779_vm7, %v750_v14  ;;  %666 = vmatprep.subr.mxu0 %v748_v1 }
  0x3d   :  { %673 = vmatprep.subr.mxu1 %v748_v1  ;;  %667 = vmatpush3.msra.mxu0 %v189_v35 }
  0x3e   :  { %668 = vmatprep.mubr.msk.f32.mxu0 %vm749_vm0, %v748_v1  ;;  %674 = vmatpush3.msk.msra.mxu1 %vm786_vm10, %v750_v14 }
  0x3f   :  { %669 = vmatmul.mubr.f32.vlgmr.msra.gmra.mxu0 %v820_v30  ;;  %675 = vmatprep.subr.mxu1 %v748_v1 }
  0x40   :  { %676 = vmatpush3.msk.msra.mxu1 %vm797_vm12, %v750_v14  ;;  %679 = vmatprep.mubr.msk.f32.mxu1 %vm749_vm0, %v748_v1 }
  0x41   :  { %677 = vmatprep.subr.mxu1 %v748_v1 }
  0x42   :  { %678 = vmatpush3.msk.msra.mxu1 %vm809_vm13, %v750_v14 }
  0x43   :  { %680 = vmatmul.mubr.f32.vlgmr.msra.gmra.mxu1 %v820_v30 }
  0xea   :  { %v141_v45 = vpop.f32.mrf.mxu0 }
  0xec   :  { %v626_v46 = vpop.f32.mrf.mxu0 }
  0xf2   :  { %v304_v49 = vpop.f32.mrf.mxu0 }
  0xf3   :  { %v228_v47 = vpop.f32.mrf.mxu1 }
  0xf4   :  { %v648_v50 = vpop.f32.mrf.mxu0  ;;  %v229_v52 = vadd.f32 %v228_v47, %v141_v45 }
  0xf5   :  { %v637_v48 = vpop.f32.mrf.mxu1 }
  0xf6   :  { %v305_v54 = vadd.f32 %v304_v49, %v229_v52 }
  0xfb   :  { %v377_v51 = vpop.f32.mrf.mxu1 }
  0xfc   :  { %v378_v56 = vadd.f32 %v377_v51, %v305_v54 }
  0xfd   :  { %v659_v53 = vpop.f32.mrf.mxu1 }
  0xff   :  { %v456_v55 = vpop.f32.mrf.mxu0 }
 0x100   :  { %v457_v58 = vadd.f32 %v456_v55, %v378_v56 }
 0x101   :  { %v670_v57 = vpop.f32.mrf.mxu0 }
 0x103   :  { %v527_v59 = vpop.f32.mrf.mxu1 }
 0x104   :  { %v528_v60 = vadd.f32 %v527_v59, %v457_v58 }
 0x105   :  { %v681_v61 = vpop.f32.mrf.mxu1 }
 0x106   :  { %690 = vrsqrt.f32 %v528_v60  ;;  %vm533_vm14 = vcmp.eq.f32.partialorder %v528_v60, inf  ;;  %v536_v0 = vand.u32 2147483648, %v528_v60  ;;  %vm535_vm0 = vcmp.eq.f32.partialorder %v528_v60, 0.0 }
 0x113   :  { %v691_v62 = vpop.eup %690 }
 0x114   :  { %v532_v63 = vmul.f32 %v691_v62, %v528_v60 }
 0x116   :  { %v534_v2 = vsel %vm533_vm14, %v528_v60, %v532_v63 }
 0x117   :  { %v537_v3 = vsel %vm535_vm0, %v536_v0, %v534_v2 }
 0x118   :  { %v539_v4 = vsel %vm538_vm15, %v537_v3, 0.0 }
 0x119   :  { %540 = vadd.xlane.f32.xlu0 %v539_v4 }
 0x1a2   :  { %v541_v5 = vpop.xlane.xlu0 %540 }
 0x1a3   :  { %v542_v6 = vmul.f32 0.0625, %v541_v5 }
 0x1a5   :  { %vm543_vm2 = vcmp.lt.f32.partialorder %v542_v6, 5.0 }
 0x1a6   :  { %v544_v7 = vsel %vm543_vm2, 1.0, %v748_v1 }
 0x1a7   :  { %v546_v8 = vsel %vm545_vm1, %v544_v7, 0.0 }
 0x1a8   :  { %547 = vadd.xlane.f32.xlu0 %v546_v8 }
 0x231   :  { %v548_v9 = vpop.xlane.xlu0 %547 }
 0x232   :  { %v549_v10 = vrot.slane %v548_v9, 4 }
 0x234   :  { %v550_v11 = vadd.f32 %v549_v10, %v548_v9 }
 0x236   :  { %v551_v12 = vrot.slane %v550_v11, 2 }
 0x238   :  { %v552_v13 = vadd.f32 %v551_v12, %v550_v11 }
 0x23a   :  { %v553_v14 = vrot.slane %v552_v13, 1 }
 0x23c   :  { %v554_v15 = vadd.f32 %v553_v14, %v552_v13 }
 0x23e   :  { %682 = vpush %v554_v15 }
 0x26f   :  { %s683_s0 = spop %682 }
 0x270   :  { %s556_s1 = smul.f32 12.5, %s683_s0 }
 0x272   :  { %558 = sst [smem:[#allocation7]] %s556_s1 }
 0x273   :  { %566 = dma.smem_to_hbm %s751_s19, 16, %s887_s2, [#allocation4]  }
 0x274   :  { %744 = dma.done.wait [#allocation4], 16  }
 0x275   :  { %745 = vsyncadd [#allocation4], 4294967280 }
 0x276   :  { %570 = sfence }
 0x277   :  { %571 = vsyncpa [#allocation3], 1 }
 0x278   :  { %572 = vsyncpa [#allocation6], 1 }
 0x279   :  { %573 = vsyncpa [#allocation4], 1 }

</bundles_post_ra>
